<compile_context>
chip_gen: v6e
topology: v6e:2x2x1
jax: 0.10.0
libtpu: 0.0.40
codegen_flags: <defaults>
</compile_context>

<pallas_src>
import functools

import jax
import jax.numpy as jnp
from jax import lax
from jax.experimental import pallas as pl
from jax.experimental.pallas import tpu as pltpu


def _graph_dropout_kernel(x_ref, o_ref, *, threshold, seed,
                          tile_rows, tile_cols):
    i = pl.program_id(0)
    j = pl.program_id(1)
    shape = x_ref.shape

    # Absolute element coordinates (tiling-independent randomness).
    rows = lax.broadcasted_iota(jnp.uint32, shape, 0) + \
        (i * tile_rows).astype(jnp.uint32)
    cols = lax.broadcasted_iota(jnp.uint32, shape, 1) + \
        (j * tile_cols).astype(jnp.uint32)

    # Counter-based stateless PRNG: mix (seed, row, col) with a lowbias32-style
    # integer finalizer.  Pure VPU int ops -> works on Mosaic and interpret.
    h = (rows * jnp.uint32(0x9E3779B1)) ^ (cols * jnp.uint32(0x85EBCA77))
    h = h ^ jnp.uint32(seed)
    h ^= h >> 16
    h *= jnp.uint32(0x7FEB352D)
    h ^= h >> 15
    h *= jnp.uint32(0x846CA68B)
    h ^= h >> 16

    keep = h < jnp.uint32(threshold)          # Bernoulli(keep_prob)
    x = x_ref[...]
    o_ref[...] = jnp.where(keep, x, jnp.zeros_like(x))  # no 1/(1-p) rescale


def graph_dropout(adjacency_matrix, *, p=0.5, seed=0, training=True,
                  donate_input=False, target_block_bytes=2 * 1024 * 1024):
    """Pallas implementation of GraphDropout.forward.

    NOTE: matches the quirky PyTorch module exactly — the surviving entries
    are NOT rescaled by 1/(1-p) (unlike nn.Dropout).
    """
    if not training or p <= 0.0:
        return adjacency_matrix
    if p >= 1.0:
        return jnp.zeros_like(adjacency_matrix)

    n_rows, n_cols = adjacency_matrix.shape
    itemsize = jnp.dtype(adjacency_matrix.dtype).itemsize

    # ---- tile selection: lane-dense, (8,128)-aligned, ~target_block_bytes ----
    # Column tile: keep full width unless even an 8-row slab would blow budget.
    if n_cols <= 128 or n_cols * itemsize * 8 <= target_block_bytes:
        tile_cols = n_cols
    else:
        tile_cols = min(
            n_cols,
            max(128, (target_block_bytes // (8 * itemsize) // 128) * 128))
    # Row tile: as many rows as fit in the budget (multiple of 8, or full).
    max_rows = max(8, target_block_bytes // (tile_cols * itemsize))
    if n_rows <= max_rows:
        tile_rows = n_rows
    else:
        tile_rows = max(8, (max_rows // 8) * 8)

    grid = (pl.cdiv(n_rows, tile_rows), pl.cdiv(n_cols, tile_cols))

    keep_prob = 1.0 - float(p)
    # uint32 threshold; clamp so keep_prob ~ 1.0 cannot overflow 2**32.
    threshold = min(int(keep_prob * 4294967296.0), 4294967295)

    kernel = functools.partial(
        _graph_dropout_kernel,
        threshold=threshold,
        seed=int(seed) & 0xFFFFFFFF,
        tile_rows=tile_rows,
        tile_cols=tile_cols,
    )

    return pl.pallas_call(
        kernel,
        out_shape=jax.ShapeDtypeStruct(adjacency_matrix.shape,
                                       adjacency_matrix.dtype),
        grid=grid,
        in_specs=[pl.BlockSpec((tile_rows, tile_cols), lambda i, j: (i, j))],
        out_specs=pl.BlockSpec((tile_rows, tile_cols), lambda i, j: (i, j)),
        compiler_params=pltpu.CompilerParams(
            # Tiles are fully independent (stateless hash) -> parallel is safe
            # and lets v7x shard the grid across both TensorCores.
            dimension_semantics=("parallel", "parallel"),
            # ~2 MiB/block * (in + out) * double-buffer = ~8 MiB; leave headroom
            # but be explicit so larger tiles stay portable across generations.
            vmem_limit_bytes=32 * 1024 * 1024,
        ),
        input_output_aliases={0: 0} if donate_input else {},
    )(adjacency_matrix)


if __name__ == "__main__":
    key = jax.random.PRNGKey(0)
    N = 128
    # Strictly positive entries so "dropped" is unambiguous in the checks.
    adjacency = jax.random.uniform(key, (N, N), dtype=jnp.float32,
                                   minval=0.1, maxval=1.0)

    p = 0.5
    out = jax.block_until_ready(graph_dropout(adjacency, p=p, seed=42,
                                              training=True))

    # Sanity: shape/dtype, surviving entries equal input, zeros elsewhere.
    assert out.shape == adjacency.shape and out.dtype == adjacency.dtype
    mask = out != 0.0
    assert bool(jnp.all(jnp.where(mask, out == adjacency, out == 0.0)))
    drop_frac = 1.0 - float(jnp.mean(mask.astype(jnp.float32)))
    assert abs(drop_frac - p) < 0.1, f"drop fraction {drop_frac} far from p={p}"

    # Determinism across tilings: forcing smaller tiles gives identical output.
    out_retiled = jax.block_until_ready(
        graph_dropout(adjacency, p=p, seed=42, training=True,
                      target_block_bytes=32 * 1024))
    assert bool(jnp.all(out == out_retiled))

    # Eval mode: identity.
    out_eval = jax.block_until_ready(
        graph_dropout(adjacency, p=p, training=False))
    assert bool(jnp.all(out_eval == adjacency))

    print("KERNEL_OK")
</pallas_src>

<mosaic_0001>
module attributes {stable_mosaic.version = 11 : i64} {
  func.func @_graph_dropout_kernel(%arg0: i32, %arg1: i32, %arg2: memref<128x128xf32, #tpu.memory_space<vmem>>, %arg3: memref<128x128xf32, #tpu.memory_space<vmem>>) attributes {dimension_semantics = [#tpu.dimension_semantics<parallel>, #tpu.dimension_semantics<parallel>], iteration_bounds = array<i64: 1, 1>, scalar_prefetch = 0 : i64, scratch_operands = 0 : i64, tpu.core_type = #tpu.core_type<tc>, window_params = [{transform_indices = @transform_0, window_bounds = array<i64: 128, 128>}, {transform_indices = @transform_1, window_bounds = array<i64: 128, 128>}]} {
    %0 = tpu.iota {dimensions = array<i32: 0>} : vector<128x128xi32>
    %c128_i32 = arith.constant 128 : i32
    %1 = arith.muli %arg0, %c128_i32 : i32
    %2 = vector.broadcast %1 : i32 to vector<128x128xi32>
    %3 = arith.addi %0, %2 : vector<128x128xi32>
    %4 = tpu.iota {dimensions = array<i32: 1>} : vector<128x128xi32>
    %c128_i32_0 = arith.constant 128 : i32
    %5 = arith.muli %arg1, %c128_i32_0 : i32
    %6 = vector.broadcast %5 : i32 to vector<128x128xi32>
    %7 = arith.addi %4, %6 : vector<128x128xi32>
    %c-1640531535_i32 = arith.constant -1640531535 : i32
    %8 = vector.broadcast %c-1640531535_i32 : i32 to vector<128x128xi32>
    %9 = arith.muli %3, %8 : vector<128x128xi32>
    %c-2048144777_i32 = arith.constant -2048144777 : i32
    %10 = vector.broadcast %c-2048144777_i32 : i32 to vector<128x128xi32>
    %11 = arith.muli %7, %10 : vector<128x128xi32>
    %12 = arith.xori %9, %11 : vector<128x128xi32>
    %c42_i32 = arith.constant 42 : i32
    %13 = vector.broadcast %c42_i32 : i32 to vector<128x128xi32>
    %14 = arith.xori %12, %13 : vector<128x128xi32>
    %c16_i32 = arith.constant 16 : i32
    %15 = vector.broadcast %c16_i32 : i32 to vector<128x128xi32>
    %16 = arith.shrui %14, %15 : vector<128x128xi32>
    %17 = arith.xori %14, %16 : vector<128x128xi32>
    %c2146121005_i32 = arith.constant 2146121005 : i32
    %18 = vector.broadcast %c2146121005_i32 : i32 to vector<128x128xi32>
    %19 = arith.muli %17, %18 : vector<128x128xi32>
    %c15_i32 = arith.constant 15 : i32
    %20 = vector.broadcast %c15_i32 : i32 to vector<128x128xi32>
    %21 = arith.shrui %19, %20 : vector<128x128xi32>
    %22 = arith.xori %19, %21 : vector<128x128xi32>
    %c-2073254261_i32 = arith.constant -2073254261 : i32
    %23 = vector.broadcast %c-2073254261_i32 : i32 to vector<128x128xi32>
    %24 = arith.muli %22, %23 : vector<128x128xi32>
    %c16_i32_1 = arith.constant 16 : i32
    %25 = vector.broadcast %c16_i32_1 : i32 to vector<128x128xi32>
    %26 = arith.shrui %24, %25 : vector<128x128xi32>
    %27 = arith.xori %24, %26 : vector<128x128xi32>
    %c-2147483648_i32 = arith.constant -2147483648 : i32
    %28 = vector.broadcast %c-2147483648_i32 : i32 to vector<128x128xi32>
    %29 = arith.cmpi ult, %27, %28 : vector<128x128xi32>
    %c0 = arith.constant 0 : index
    %c0_2 = arith.constant 0 : index
    %30 = vector.load %arg2[%c0, %c0_2] : memref<128x128xf32, #tpu.memory_space<vmem>>, vector<128x128xf32>
    %cst = arith.constant 0.000000e+00 : f32
    %31 = vector.broadcast %cst : f32 to vector<128x128xf32>
    %32 = arith.select %29, %30, %31 : vector<128x128xi1>, vector<128x128xf32>
    %c0_3 = arith.constant 0 : index
    %c0_4 = arith.constant 0 : index
    %33 = vector.load %arg3[%c0_3, %c0_4] : memref<128x128xf32, #tpu.memory_space<vmem>>, vector<128x128xf32>
    tpu.vector_store %arg3[%c0_3, %c0_4], %32 {strides = array<i32>} : memref<128x128xf32, #tpu.memory_space<vmem>>, vector<128x128xf32>,
    return
  }
  func.func @transform_0(%arg0: i32, %arg1: i32) -> (i32, i32) {
    %c0_i32 = arith.constant 0 : i32
    return %arg0, %arg1 : i32, i32
  }
  func.func @transform_1(%arg0: i32, %arg1: i32) -> (i32, i32) {
    %c0_i32 = arith.constant 0 : i32
    return %arg0, %arg1 : i32, i32
  }
}

</mosaic_0001>

<bundles_post_ra>
// kernel: tpu_custom_call.1
= control target key start
LH: loop header
LB: loop body
LE: loop exit
PB: predicated region body
PF: predicated region fallthrough
CT: control target
= control target key end

     0   :  { %6 = vsyncpa [#allocation3], 0  ;;  %s434_s0 = inlined_call_operand.hbm [shape: f32[128,128], index: 0, kind: input, shape index: {}]   ;;  %s435_s1 = inlined_call_operand.hbm [shape: f32[128,128], index: 1, kind: output, shape index: {}]  }
   0x1   :  { %7 = vsyncpa [#allocation4], 0  ;;  %s369_s6 = smov [#allocation2]  }
   0x2   :  { %s13_s7 = sshll.u32 %s369_s6, 4  ;;  %s14_s7 = int_to_ptr.vmem [resolvable:$true] %s13_s7 }
   0x3   :  { %s333_s8 = scalar_lea.vmem %s14_s7, 2048  ;;  %p338_p1 = scmp.lt.s32.totalorder %s14_s7, %s14_s7 }
   0x4   :  { %p334_p0 = scmp.ne.s32.totalorder %s14_s7, %s333_s8  ;;  %p339_p2 = scmp.lt.s32.totalorder %s333_s8, %s333_s8 }
   0x6   :  { %p340_p3 = por %p339_p2, %p338_p1 }
   0x8   :  { %p341_p4 = pnand %p340_p3, %p334_p0 }
   0xa   :  { %344 = shalt.err (!%p341_p4)
}
   0xb   :  { %s370_s9 = smov 128   ;;  %s371_s10 = smov 8  }
   0xc   :  { %19 = dma.hbm_to_vmem [thread:$0]  %s434_s0, 2048, %s14_s7, [#allocation3], %s370_s9, %s370_s9, %s371_s10  }
   0xd   :  { %365 = dma.done.wait [#allocation3], 2048  }
   0xe   :  { %366 = vsyncadd [#allocation3], 4294965248  ;;  %v23_v0 = vlaneseq  ;;  %s372_s0 = smov [#allocation5]  }
   0xf   :  { %s309_s13 = sshll.u32 %s372_s0, 4  ;;  %s310_s13 = int_to_ptr.vmem [resolvable:$true] %s309_s13 }
  0x10   :  { %v389_v1 = vshrl.u32 %v23_v0, 7  ;;  %v59_v2 = vand.u32 127, %v23_v0  ;;  %s345_s14 = scalar_lea.vmem %s310_s13, 2048  ;;  %p350_p6 = scmp.lt.s32.totalorder %s310_s13, %s310_s13 }
  0x11   :  { %p346_p5 = scmp.ne.s32.totalorder %s310_s13, %s345_s14  ;;  %p351_p7 = scmp.lt.s32.totalorder %s345_s14, %s345_s14 }
  0x12   :  { %v63_v3 = vmul.u32 2654435761, %v389_v1  ;;  %v392_v4 = vmul.u32 2246822519, %v59_v2  ;;  %v25_v5 = vadd.s32 8, %v389_v1  ;;  %v26_v6 = vadd.s32 16, %v389_v1 }
  0x13   :  { %v27_v7 = vadd.s32 24, %v389_v1  ;;  %v28_v8 = vadd.s32 32, %v389_v1  ;;  %v29_v9 = vadd.s32 40, %v389_v1  ;;  %v30_v10 = vadd.s32 48, %v389_v1  ;;  %p352_p8 = por %p351_p7, %p350_p6 }
  0x14   :  { %v80_v11 = vxor.u32 %v392_v4, %v63_v3  ;;  %v64_v12 = vmul.u32 2654435761, %v25_v5  ;;  %v65_v13 = vmul.u32 2654435761, %v26_v6  ;;  %v31_v15 = vadd.s32 56, %v389_v1 }
  0x15   :  { %v66_v14 = vmul.u32 2654435761, %v27_v7  ;;  %v67_v19 = vmul.u32 2654435761, %v28_v8  ;;  %v406_v23 = vadd.s32 64, %v389_v1  ;;  %p353_p9 = pnand %p352_p8, %p346_p5 }
  0x16   :  { %v96_v16 = vxor.u32 42, %v80_v11  ;;  %v81_v17 = vxor.u32 %v392_v4, %v64_v12  ;;  %v82_v18 = vxor.u32 %v392_v4, %v65_v13  ;;  %v68_v21 = vmul.u32 2654435761, %v29_v9 }
  0x17   :  { %v83_v20 = vxor.u32 %v392_v4, %v66_v14  ;;  %v69_v22 = vmul.u32 2654435761, %v30_v10  ;;  %v84_v27 = vxor.u32 %v392_v4, %v67_v19  ;;  %v70_v31 = vmul.u32 2654435761, %v31_v15  ;;  %v256_v19 = vld [vmem:[#allocation2] sm:$0xff] }
  0x18   :  { %v112_v24 = vshrl.u32 %v96_v16, 16  ;;  %v97_v25 = vxor.u32 42, %v81_v17  ;;  %v98_v26 = vxor.u32 42, %v82_v18  ;;  %v85_v29 = vxor.u32 %v392_v4, %v68_v21 }
  0x19   :  { %v99_v28 = vxor.u32 42, %v83_v20  ;;  %v86_v30 = vxor.u32 %v392_v4, %v69_v22  ;;  %v100_v35 = vxor.u32 42, %v84_v27  ;;  %v87_v39 = vxor.u32 %v392_v4, %v70_v31  ;;  %v258_v31 = vld [vmem:[#allocation2 + $0x10] sm:$0xff] }
  0x1a   :  { %v128_v32 = vxor.u32 %v112_v24, %v96_v16  ;;  %v113_v33 = vshrl.u32 %v97_v25, 16  ;;  %v114_v34 = vshrl.u32 %v98_v26, 16  ;;  %v101_v37 = vxor.u32 42, %v85_v29  ;;  %v257_v29 = vld [vmem:[#allocation2 + $0x8] sm:$0xff] }
  0x1b   :  { %v115_v36 = vshrl.u32 %v99_v28, 16  ;;  %v102_v38 = vxor.u32 42, %v86_v30  ;;  %v116_v43 = vshrl.u32 %v100_v35, 16  ;;  %v103_v47 = vxor.u32 42, %v87_v39  ;;  %v260_v39 = vld [vmem:[#allocation2 + $0x20] sm:$0xff] }
  0x1c   :  { %v144_v40 = vmul.u32 2146121005, %v128_v32  ;;  %v129_v41 = vxor.u32 %v113_v33, %v97_v25  ;;  %v130_v42 = vxor.u32 %v114_v34, %v98_v26  ;;  %v117_v45 = vshrl.u32 %v101_v37, 16 }
  0x1d   :  { %v131_v44 = vxor.u32 %v115_v36, %v99_v28  ;;  %v118_v46 = vshrl.u32 %v102_v38, 16  ;;  %v132_v51 = vxor.u32 %v116_v43, %v100_v35  ;;  %v119_v55 = vshrl.u32 %v103_v47, 16  ;;  %v259_v35 = vld [vmem:[#allocation2 + $0x18] sm:$0xff] }
  0x1e   :  { %v160_v48 = vshrl.u32 %v144_v40, 15  ;;  %v145_v49 = vmul.u32 2146121005, %v129_v41  ;;  %v146_v50 = vmul.u32 2146121005, %v130_v42  ;;  %v133_v53 = vxor.u32 %v117_v45, %v101_v37 }
  0x1f   :  { %v147_v52 = vmul.u32 2146121005, %v131_v44  ;;  %v134_v54 = vxor.u32 %v118_v46, %v102_v38  ;;  %v148_v59 = vmul.u32 2146121005, %v132_v51  ;;  %v135_v63 = vxor.u32 %v119_v55, %v103_v47  ;;  %v261_v44 = vld [vmem:[#allocation2 + $0x28] sm:$0xff]  ;;  %v262_v47 = vld [vmem:[#allocation2 + $0x30] sm:$0xff] }
  0x20   :  { %v176_v56 = vxor.u32 %v160_v48, %v144_v40  ;;  %v161_v57 = vshrl.u32 %v145_v49, 15  ;;  %v162_v58 = vshrl.u32 %v146_v50, 15  ;;  %v149_v61 = vmul.u32 2146121005, %v133_v53 }
  0x21   :  { %v163_v60 = vshrl.u32 %v147_v52, 15  ;;  %v150_v62 = vmul.u32 2146121005, %v134_v54  ;;  %v164_v5 = vshrl.u32 %v148_v59, 15  ;;  %v151_v9 = vmul.u32 2146121005, %v135_v63 }
  0x22   :  { %v192_v0 = vmul.u32 2221713035, %v176_v56  ;;  %v177_v2 = vxor.u32 %v161_v57, %v145_v49  ;;  %v178_v3 = vxor.u32 %v162_v58, %v146_v50  ;;  %v165_v7 = vshrl.u32 %v149_v61, 15  ;;  %v263_v54 = vld [vmem:[#allocation2 + $0x38] sm:$0xff] }
  0x23   :  { %v179_v6 = vxor.u32 %v163_v60, %v147_v52  ;;  %v166_v8 = vshrl.u32 %v150_v62, 15  ;;  %v180_v13 = vxor.u32 %v164_v5, %v148_v59  ;;  %v167_v17 = vshrl.u32 %v151_v9, 15 }
  0x24   :  { %v208_v10 = vshrl.u32 %v192_v0, 16  ;;  %v193_v11 = vmul.u32 2221713035, %v177_v2  ;;  %v194_v12 = vmul.u32 2221713035, %v178_v3  ;;  %v181_v15 = vxor.u32 %v165_v7, %v149_v61 }
  0x25   :  { %v195_v14 = vmul.u32 2221713035, %v179_v6  ;;  %v182_v16 = vxor.u32 %v166_v8, %v150_v62  ;;  %v196_v22 = vmul.u32 2221713035, %v180_v13  ;;  %v183_v27 = vxor.u32 %v167_v17, %v151_v9 }
  0x26   :  { %v224_v18 = vxor.u32 %v208_v10, %v192_v0  ;;  %v209_v20 = vshrl.u32 %v193_v11, 16  ;;  %v210_v21 = vshrl.u32 %v194_v12, 16  ;;  %v197_v25 = vmul.u32 2221713035, %v181_v15 }
  0x27   :  { %v211_v24 = vshrl.u32 %v195_v14, 16  ;;  %v198_v26 = vmul.u32 2221713035, %v182_v16  ;;  %v212_v32 = vshrl.u32 %v196_v22, 16  ;;  %v199_v40 = vmul.u32 2221713035, %v183_v27 }
  0x28   :  { %vm240_vm0 = vcmp.lt.u32.totalorder %v224_v18, 2147483648  ;;  %v225_v28 = vxor.u32 %v209_v20, %v193_v11  ;;  %v226_v30 = vxor.u32 %v210_v21, %v194_v12  ;;  %v213_v36 = vshrl.u32 %v197_v25, 16 }
  0x29   :  { %v272_v33 = vsel %vm240_vm0, %v256_v19, 0.0  ;;  %v227_v34 = vxor.u32 %v211_v24, %v195_v14  ;;  %v214_v37 = vshrl.u32 %v198_v26, 16  ;;  %v228_v38 = vxor.u32 %v212_v32, %v196_v22 }
  0x2a   :  { %288 = vst [vmem:[#allocation5] sm:$0xff] %v272_v33  ;;  %vm241_vm1 = vcmp.lt.u32.totalorder %v225_v28, 2147483648  ;;  %vm242_vm2 = vcmp.lt.u32.totalorder %v226_v30, 2147483648  ;;  %v229_v43 = vxor.u32 %v213_v36, %v197_v25  ;;  %v215_v48 = vshrl.u32 %v199_v40, 16 }
  0x2b   :  { %v273_v41 = vsel %vm241_vm1, %v257_v29, 0.0  ;;  %v274_v42 = vsel %vm242_vm2, %v258_v31, 0.0  ;;  %vm243_vm3 = vcmp.lt.u32.totalorder %v227_v34, 2147483648  ;;  %vm244_vm4 = vcmp.lt.u32.totalorder %v228_v38, 2147483648 }
  0x2c   :  { %289 = vst [vmem:[#allocation5 + $0x8] sm:$0xff] %v273_v41  ;;  %290 = vst [vmem:[#allocation5 + $0x10] sm:$0xff] %v274_v42  ;;  %v275_v45 = vsel %vm243_vm3, %v259_v35, 0.0  ;;  %v230_v46 = vxor.u32 %v214_v37, %v198_v26  ;;  %v276_v49 = vsel %vm244_vm4, %v260_v39, 0.0  ;;  %vm245_vm5 = vcmp.lt.u32.totalorder %v229_v43, 2147483648 }
  0x2d   :  { %291 = vst [vmem:[#allocation5 + $0x18] sm:$0xff] %v275_v45  ;;  %v71_v50 = vmul.u32 2654435761, %v406_v23  ;;  %v33_v51 = vadd.s32 72, %v389_v1  ;;  %292 = vst [vmem:[#allocation5 + $0x20] sm:$0xff] %v276_v49  ;;  %v277_v52 = vsel %vm245_vm5, %v261_v44, 0.0  ;;  %v231_v53 = vxor.u32 %v215_v48, %v199_v40 }
  0x2e   :  { %vm246_vm6 = vcmp.lt.u32.totalorder %v230_v46, 2147483648  ;;  %v34_v55 = vadd.s32 80, %v389_v1  ;;  %293 = vst [vmem:[#allocation5 + $0x28] sm:$0xff] %v277_v52  ;;  %v35_v59 = vadd.s32 88, %v389_v1  ;;  %v36_v23 = vadd.s32 96, %v389_v1 }
  0x2f   :  { %v278_v56 = vsel %vm246_vm6, %v262_v47, 0.0  ;;  %v88_v57 = vxor.u32 %v392_v4, %v71_v50  ;;  %v72_v58 = vmul.u32 2654435761, %v33_v51  ;;  %vm247_vm7 = vcmp.lt.u32.totalorder %v231_v53, 2147483648 }
  0x30   :  { %294 = vst [vmem:[#allocation5 + $0x30] sm:$0xff] %v278_v56  ;;  %v73_v60 = vmul.u32 2654435761, %v34_v55  ;;  %v37_v61 = vadd.s32 104, %v389_v1  ;;  %v279_v62 = vsel %vm247_vm7, %v263_v54, 0.0  ;;  %v38_v7 = vadd.s32 112, %v389_v1 }
  0x31   :  { %v104_v63 = vxor.u32 42, %v88_v57  ;;  %v89_v0 = vxor.u32 %v392_v4, %v72_v58  ;;  %v74_v2 = vmul.u32 2654435761, %v35_v59  ;;  %295 = vst [vmem:[#allocation5 + $0x38] sm:$0xff] %v279_v62  ;;  %v75_v5 = vmul.u32 2654435761, %v36_v23 }
  0x32   :  { %v90_v3 = vxor.u32 %v392_v4, %v73_v60  ;;  %v76_v6 = vmul.u32 2654435761, %v37_v61  ;;  %v39_v11 = vadd.s32 120, %v389_v1  ;;  %v77_v15 = vmul.u32 2654435761, %v38_v7 }
  0x33   :  { %v120_v8 = vshrl.u32 %v104_v63, 16  ;;  %v105_v9 = vxor.u32 42, %v89_v0  ;;  %v91_v10 = vxor.u32 %v392_v4, %v74_v2  ;;  %v92_v13 = vxor.u32 %v392_v4, %v75_v5 }
  0x34   :  { %v106_v12 = vxor.u32 42, %v90_v3  ;;  %v93_v14 = vxor.u32 %v392_v4, %v76_v6  ;;  %v78_v19 = vmul.u32 2654435761, %v39_v11  ;;  %v94_v24 = vxor.u32 %v392_v4, %v77_v15  ;;  %v266_v15 = vld [vmem:[#allocation2 + $0x50] sm:$0xff] }
  0x35   :  { %v136_v16 = vxor.u32 %v120_v8, %v104_v63  ;;  %v121_v17 = vshrl.u32 %v105_v9, 16  ;;  %v107_v18 = vxor.u32 42, %v91_v10  ;;  %v108_v21 = vxor.u32 42, %v92_v13  ;;  %v264_v63 = vld [vmem:[#allocation2 + $0x40] sm:$0xff]  ;;  %v265_v10 = vld [vmem:[#allocation2 + $0x48] sm:$0xff] }
  0x36   :  { %v122_v20 = vshrl.u32 %v106_v12, 16  ;;  %v109_v22 = vxor.u32 42, %v93_v14  ;;  %v95_v1 = vxor.u32 %v392_v4, %v78_v19  ;;  %v110_v31 = vxor.u32 42, %v94_v24  ;;  %v267_v19 = vld [vmem:[#allocation2 + $0x58] sm:$0xff] }
  0x37   :  { %v152_v25 = vmul.u32 2146121005, %v136_v16  ;;  %v137_v26 = vxor.u32 %v121_v17, %v105_v9  ;;  %v123_v27 = vshrl.u32 %v107_v18, 16  ;;  %v124_v29 = vshrl.u32 %v108_v21, 16 }
  0x38   :  { %v138_v28 = vxor.u32 %v122_v20, %v106_v12  ;;  %v125_v30 = vshrl.u32 %v109_v22, 16  ;;  %v111_v35 = vxor.u32 42, %v95_v1  ;;  %v126_v39 = vshrl.u32 %v110_v31, 16 }
  0x39   :  { %v168_v32 = vshrl.u32 %v152_v25, 15  ;;  %v153_v33 = vmul.u32 2146121005, %v137_v26  ;;  %v139_v34 = vxor.u32 %v123_v27, %v107_v18  ;;  %v140_v37 = vxor.u32 %v124_v29, %v108_v21  ;;  %v269_v27 = vld [vmem:[#allocation2 + $0x68] sm:$0xff] }
  0x3a   :  { %v154_v36 = vmul.u32 2146121005, %v138_v28  ;;  %v141_v38 = vxor.u32 %v125_v30, %v109_v22  ;;  %v127_v43 = vshrl.u32 %v111_v35, 16  ;;  %v142_v4 = vxor.u32 %v126_v39, %v110_v31 }
  0x3b   :  { %v184_v40 = vxor.u32 %v168_v32, %v152_v25  ;;  %v169_v41 = vshrl.u32 %v153_v33, 15  ;;  %v155_v42 = vmul.u32 2146121005, %v139_v34  ;;  %v156_v45 = vmul.u32 2146121005, %v140_v37  ;;  %v268_v25 = vld [vmem:[#allocation2 + $0x60] sm:$0xff] }
  0x3c   :  { %v170_v44 = vshrl.u32 %v154_v36, 15  ;;  %v157_v46 = vmul.u32 2146121005, %v141_v38  ;;  %v143_v50 = vxor.u32 %v127_v43, %v111_v35  ;;  %v158_v54 = vmul.u32 2146121005, %v142_v4  ;;  %v270_v34 = vld [vmem:[#allocation2 + $0x70] sm:$0xff] }
  0x3d   :  { %v200_v47 = vmul.u32 2221713035, %v184_v40  ;;  %v185_v48 = vxor.u32 %v169_v41, %v153_v33  ;;  %v171_v49 = vshrl.u32 %v155_v42, 15  ;;  %v172_v52 = vshrl.u32 %v156_v45, 15 }
  0x3e   :  { %v186_v51 = vxor.u32 %v170_v44, %v154_v36  ;;  %v173_v53 = vshrl.u32 %v157_v46, 15  ;;  %v159_v58 = vmul.u32 2146121005, %v143_v50  ;;  %v174_v61 = vshrl.u32 %v158_v54, 15  ;;  %v271_v36 = vld [vmem:[#allocation2 + $0x78] sm:$0xff] }
  0x3f   :  { %v216_v55 = vshrl.u32 %v200_v47, 16  ;;  %v201_v56 = vmul.u32 2221713035, %v185_v48  ;;  %v187_v57 = vxor.u32 %v171_v49, %v155_v42  ;;  %v188_v60 = vxor.u32 %v172_v52, %v156_v45 }
  0x40   :  { %v202_v59 = vmul.u32 2221713035, %v186_v51  ;;  %v189_v23 = vxor.u32 %v173_v53, %v157_v46  ;;  %v175_v3 = vshrl.u32 %v159_v58, 15  ;;  %v190_v8 = vxor.u32 %v174_v61, %v158_v54 }
  0x41   :  { %v232_v62 = vxor.u32 %v216_v55, %v200_v47  ;;  %v217_v0 = vshrl.u32 %v201_v56, 16  ;;  %v203_v2 = vmul.u32 2221713035, %v187_v57  ;;  %v204_v6 = vmul.u32 2221713035, %v188_v60 }
  0x42   :  { %v218_v5 = vshrl.u32 %v202_v59, 16  ;;  %v205_v7 = vmul.u32 2221713035, %v189_v23  ;;  %v191_v12 = vxor.u32 %v175_v3, %v159_v58  ;;  %v206_v20 = vmul.u32 2221713035, %v190_v8 }
  0x43   :  { %vm248_vm8 = vcmp.lt.u32.totalorder %v232_v62, 2147483648  ;;  %v233_v9 = vxor.u32 %v217_v0, %v201_v56  ;;  %v219_v11 = vshrl.u32 %v203_v2, 16  ;;  %v220_v16 = vshrl.u32 %v204_v6, 16 }
  0x44   :  { %v280_v13 = vsel %vm248_vm8, %v264_v63, 0.0  ;;  %v234_v14 = vxor.u32 %v218_v5, %v202_v59  ;;  %v221_v17 = vshrl.u32 %v205_v7, 16  ;;  %v207_v21 = vmul.u32 2221713035, %v191_v12 }
  0x45   :  { %296 = vst [vmem:[#allocation5 + $0x40] sm:$0xff] %v280_v13  ;;  %vm249_vm9 = vcmp.lt.u32.totalorder %v233_v9, 2147483648  ;;  %v235_v18 = vxor.u32 %v219_v11, %v203_v2  ;;  %v236_v24 = vxor.u32 %v220_v16, %v204_v6  ;;  %v222_v28 = vshrl.u32 %v206_v20, 16 }
  0x46   :  { %v281_v22 = vsel %vm249_vm9, %v265_v10, 0.0  ;;  %vm250_vm10 = vcmp.lt.u32.totalorder %v234_v14, 2147483648  ;;  %v237_v26 = vxor.u32 %v221_v17, %v205_v7  ;;  %v223_v29 = vshrl.u32 %v207_v21, 16 }
  0x47   :  { %297 = vst [vmem:[#allocation5 + $0x48] sm:$0xff] %v281_v22  ;;  %v282_v1 = vsel %vm250_vm10, %v266_v15, 0.0  ;;  %vm251_vm11 = vcmp.lt.u32.totalorder %v235_v18, 2147483648  ;;  %vm252_vm12 = vcmp.lt.u32.totalorder %v236_v24, 2147483648  ;;  %v238_v33 = vxor.u32 %v222_v28, %v206_v20 }
  0x48   :  { %298 = vst [vmem:[#allocation5 + $0x50] sm:$0xff] %v282_v1  ;;  %v283_v30 = vsel %vm251_vm11, %v267_v19, 0.0  ;;  %vm253_vm13 = vcmp.lt.u32.totalorder %v237_v26, 2147483648  ;;  %v284_v31 = vsel %vm252_vm12, %v268_v25, 0.0  ;;  %v239_v35 = vxor.u32 %v223_v29, %v207_v21 }
  0x49   :  { %299 = vst [vmem:[#allocation5 + $0x58] sm:$0xff] %v283_v30  ;;  %v285_v32 = vsel %vm253_vm13, %v269_v27, 0.0  ;;  %300 = vst [vmem:[#allocation5 + $0x60] sm:$0xff] %v284_v31  ;;  %vm254_vm14 = vcmp.lt.u32.totalorder %v238_v33, 2147483648 }
  0x4a   :  { %301 = vst [vmem:[#allocation5 + $0x68] sm:$0xff] %v285_v32  ;;  %vm255_vm15 = vcmp.lt.u32.totalorder %v239_v35, 2147483648  ;;  %v286_v37 = vsel %vm254_vm14, %v270_v34, 0.0 }
  0x4b   :  { %v287_v38 = vsel %vm255_vm15, %v271_v36, 0.0  ;;  %302 = vst [vmem:[#allocation5 + $0x70] sm:$0xff] %v286_v37 }
  0x4c   :  { %303 = vst [vmem:[#allocation5 + $0x78] sm:$0xff] %v287_v38 }
  0x4d   :  { %356 = shalt.err (!%p353_p9)
}
  0x4e   :  { %315 = dma.vmem_to_hbm [thread:$0]  %s310_s13, 2048, %s435_s1, [#allocation4], %s370_s9, %s370_s9, %s371_s10  }
  0x4f   :  { %367 = dma.done.wait [#allocation4], 2048  }
  0x50   :  { %368 = vsyncadd [#allocation4], 4294965248 }
  0x51   :  { %319 = vsyncpa [#allocation3], 1 }
  0x52   :  { %320 = vsyncpa [#allocation4], 1 }

</bundles_post_ra>
